<compile_context>
chip_gen: v6e
topology: v6e:2x2x1
jax: 0.10.0
libtpu: 0.0.40
codegen_flags: <defaults>
</compile_context>

<pallas_src>
import functools

import jax
import jax.numpy as jnp
from jax import lax
from jax.experimental import pallas as pl
from jax.experimental.pallas import tpu as pltpu

_INV_SQRT_2 = 0.7071067811865476


def _round_up(a: int, b: int) -> int:
    return (a + b - 1) // b * b


def _cdiv(a: int, b: int) -> int:
    return (a + b - 1) // b


def _sublane_multiple(dtype) -> int:
    # f32 -> 8, bf16 -> 16, int8/fp8 -> 32 (second-minor tiling constraint).
    itemsize = jnp.dtype(dtype).itemsize
    return max(8, 32 // max(1, itemsize))


def _tpu_vmem_and_cores():
    """(vmem_capacity_bytes, tensorcores_per_chip) with a safe fallback."""
    vmem = 128 << 20
    try:
        info = pltpu.get_tpu_info()
        vmem = int(getattr(info, "vmem_capacity_bytes", vmem))
    except Exception:
        pass
    # v7x: 64 MiB VMEM per TC and 2 TCs per chip; v5e/v6e: 128 MiB, 1 TC.
    num_cores = 2 if vmem <= (64 << 20) else 1
    return vmem, num_cores


def _gelu_exact(h):
    # Exact erf GELU (matches torch.nn.GELU default).
    return 0.5 * h * (1.0 + lax.erf(h * _INV_SQRT_2))


# ---------------------------------------------------------------------------
# Kernels
# ---------------------------------------------------------------------------

def _ffn_resident_kernel(x_ref, w1_ref, b1_ref, w2_ref, b2_ref, o_ref):
    # Grid: (M tiles [parallel],).  Weights have constant index maps -> one DMA.
    h = jnp.dot(x_ref[...], w1_ref[...], preferred_element_type=jnp.float32)
    h = _gelu_exact(h + b1_ref[...].astype(jnp.float32))
    # Dropout with p=0.0 (module default) is the identity.
    # TODO(synk): stochastic dropout for p>0 would use pltpu.prng_random_bits.
    out = jnp.dot(h.astype(w2_ref.dtype), w2_ref[...],
                  preferred_element_type=jnp.float32)
    o_ref[...] = (out + b2_ref[...].astype(jnp.float32)).astype(o_ref.dtype)


def _ffn_stream_kernel(x_ref, w1_ref, b1_ref, w2_ref, b2_ref, o_ref, acc_ref):
    # Grid: (M tiles [parallel], hidden chunks [arbitrary/reduction]).
    h_idx = pl.program_id(1)

    @pl.when(h_idx == 0)
    def _init():
        acc_ref[...] = jnp.zeros_like(acc_ref)

    h = jnp.dot(x_ref[...], w1_ref[...], preferred_element_type=jnp.float32)
    h = _gelu_exact(h + b1_ref[...].astype(jnp.float32))
    acc_ref[...] += jnp.dot(h.astype(w2_ref.dtype), w2_ref[...],
                            preferred_element_type=jnp.float32)

    @pl.when(h_idx == pl.num_programs(1) - 1)
    def _finalize():
        # Bias b2 added once per output tile (not per hidden chunk).
        o_ref[...] = (acc_ref[...] + b2_ref[...].astype(jnp.float32)).astype(o_ref.dtype)


# ---------------------------------------------------------------------------
# Footprint models (actual element sizes; bias rows pad to 8 sublanes)
# ---------------------------------------------------------------------------

def _resident_footprint(tm, dim_p, hidden_p, x_sz, w_sz, out_sz):
    return (2 * tm * dim_p * x_sz            # x tile (double-buffered)
            + 2 * dim_p * hidden_p * w_sz    # W1 (conservatively 2 buffers)
            + 2 * 8 * hidden_p * w_sz        # b1
            + 2 * hidden_p * dim_p * w_sz    # W2
            + 2 * 8 * dim_p * w_sz           # b2
            + 2 * tm * dim_p * out_sz        # out tile
            + tm * hidden_p * 4              # hidden intermediate (f32)
            + tm * dim_p * 4)                # second matmul result (f32)


def _stream_footprint(tm, dim_p, th, x_sz, w_sz, out_sz):
    return (2 * tm * dim_p * x_sz            # x tile
            + 2 * dim_p * th * w_sz          # W1 chunk
            + 2 * 8 * th * w_sz              # b1 chunk
            + 2 * th * dim_p * w_sz          # W2 chunk
            + 2 * 8 * dim_p * w_sz           # b2
            + 2 * tm * dim_p * out_sz        # out tile
            + tm * dim_p * 4                 # f32 accumulator scratch
            + tm * th * 4)                   # hidden intermediate (f32)


# ---------------------------------------------------------------------------
# Wrapper
# ---------------------------------------------------------------------------

@functools.partial(jax.jit, static_argnames=("tm", "th"))
def feed_forward(x, w1, b1, w2, b2, *, tm=None, th=None):
    """x: (..., dim).  w1: (dim, hidden), b1: (hidden,), w2: (hidden, dim), b2: (dim,).

    tm/th are optional overrides; by default both are derived from the chip's
    VMEM capacity and core count.  Passing th forces the hidden-streaming path.
    """
    dim = x.shape[-1]
    hidden = w1.shape[1]
    lead_shape = x.shape[:-1]
    x2d = x.reshape(-1, dim)
    M = x2d.shape[0]

    x_sz = jnp.dtype(x.dtype).itemsize
    w_sz = jnp.dtype(w1.dtype).itemsize
    out_sz = x_sz
    sub = _sublane_multiple(x.dtype)

    dim_p = _round_up(dim, 128)
    hidden_p = _round_up(hidden, 128)

    vmem_cap, num_cores = _tpu_vmem_and_cores()
    budget = int(vmem_cap * 0.70)   # leave headroom for compiler scratch

    def row_tiles(tm_cap):
        n_m = max(1, _cdiv(M, tm_cap))
        if num_cores > 1 and n_m == 1 and M > sub:
            n_m = 2   # give each TensorCore at least one row tile (v7x)
        tm_eff = _round_up(_cdiv(M, n_m), sub)
        n_m = max(1, _cdiv(M, tm_eff))
        return tm_eff, n_m

    # ---- Resident decision -------------------------------------------------
    tm_cap = tm if tm is not None else 256
    tm_eff, n_m = row_tiles(tm_cap)
    resident_fp = _resident_footprint(tm_eff, dim_p, hidden_p, x_sz, w_sz, out_sz)
    use_resident = (th is None) and (resident_fp <= budget)

    if use_resident:
        th_eff, n_h = hidden_p, 1
        hidden_pp = hidden_p
        footprint = resident_fp
    else:
        # ---- Streaming path: bigger row tile on 128 MiB parts --------------
        if tm is None:
            tm_cap = 512 if vmem_cap >= (100 << 20) else 256
            tm_eff, n_m = row_tiles(tm_cap)
        while True:
            if th is not None:
                th_eff = min(_round_up(th, 128), hidden_p)
                n_h = _cdiv(hidden_p, th_eff)
            else:
                n_h = 1
                while True:
                    th_eff = _round_up(_cdiv(hidden_p, n_h), 128)
                    if (_stream_footprint(tm_eff, dim_p, th_eff, x_sz, w_sz, out_sz)
                            <= budget) or th_eff == 128:
                        break
                    n_h += 1
            footprint = _stream_footprint(tm_eff, dim_p, th_eff, x_sz, w_sz, out_sz)
            if footprint <= budget or tm_eff <= sub:
                break
            tm_eff = max(sub, _round_up(tm_eff // 2, sub))
            n_m = max(1, _cdiv(M, tm_eff))
        hidden_pp = th_eff * n_h

    M_p = n_m * tm_eff

    # ---- Padding (skipped when already aligned; zero padding is exact) -----
    if M_p != M or dim_p != dim:
        x_p = jnp.pad(x2d, ((0, M_p - M), (0, dim_p - dim)))
    else:
        x_p = x2d
    if dim_p != dim or hidden_pp != hidden:
        w1_p = jnp.pad(w1, ((0, dim_p - dim), (0, hidden_pp - hidden)))
        w2_p = jnp.pad(w2, ((0, hidden_pp - hidden), (0, dim_p - dim)))
    else:
        w1_p, w2_p = w1, w2
    b1_p = (jnp.pad(b1, (0, hidden_pp - hidden)) if hidden_pp != hidden else b1
            ).reshape(1, hidden_pp)
    b2_p = (jnp.pad(b2, (0, dim_p - dim)) if dim_p != dim else b2
            ).reshape(1, dim_p)

    # ---- VMEM limit from actual footprint, capped below physical VMEM ------
    vmem_limit = int(footprint * 1.25) + (2 << 20)
    vmem_limit = max(vmem_limit, 16 << 20)
    vmem_limit = min(vmem_limit, int(vmem_cap * 0.90))
    vmem_limit = max(vmem_limit, min(footprint + (2 << 20), vmem_cap))

    out_shape = jax.ShapeDtypeStruct((M_p, dim_p), x.dtype)

    if use_resident:
        out = pl.pallas_call(
            _ffn_resident_kernel,
            out_shape=out_shape,
            grid_spec=pltpu.PrefetchScalarGridSpec(
                num_scalar_prefetch=0,
                grid=(n_m,),
                in_specs=[
                    pl.BlockSpec((tm_eff, dim_p), lambda i: (i, 0)),      # x rows
                    pl.BlockSpec((dim_p, hidden_pp), lambda i: (0, 0)),   # W1 (resident)
                    pl.BlockSpec((1, hidden_pp), lambda i: (0, 0)),       # b1
                    pl.BlockSpec((hidden_pp, dim_p), lambda i: (0, 0)),   # W2 (resident)
                    pl.BlockSpec((1, dim_p), lambda i: (0, 0)),           # b2
                ],
                out_specs=pl.BlockSpec((tm_eff, dim_p), lambda i: (i, 0)),
            ),
            compiler_params=pltpu.CompilerParams(
                dimension_semantics=("parallel",),
                vmem_limit_bytes=vmem_limit,
            ),
        )(x_p, w1_p, b1_p, w2_p, b2_p)
    else:
        out = pl.pallas_call(
            _ffn_stream_kernel,
            out_shape=out_shape,
            grid_spec=pltpu.PrefetchScalarGridSpec(
                num_scalar_prefetch=0,
                grid=(n_m, n_h),
                in_specs=[
                    pl.BlockSpec((tm_eff, dim_p), lambda i, h: (i, 0)),   # x rows
                    pl.BlockSpec((dim_p, th_eff), lambda i, h: (0, h)),   # W1 chunk
                    pl.BlockSpec((1, th_eff), lambda i, h: (0, h)),       # b1 chunk
                    pl.BlockSpec((th_eff, dim_p), lambda i, h: (h, 0)),   # W2 chunk
                    pl.BlockSpec((1, dim_p), lambda i, h: (0, 0)),        # b2
                ],
                out_specs=pl.BlockSpec((tm_eff, dim_p), lambda i, h: (i, 0)),
                scratch_shapes=[pltpu.VMEM((tm_eff, dim_p), jnp.float32)],
            ),
            compiler_params=pltpu.CompilerParams(
                dimension_semantics=("parallel", "arbitrary"),
                vmem_limit_bytes=vmem_limit,
            ),
        )(x_p, w1_p, b1_p, w2_p, b2_p)

    if M_p != M or dim_p != dim:
        out = out[:M, :dim]
    return out.reshape(*lead_shape, dim)


def _reference(x, w1, b1, w2, b2):
    h = x @ w1 + b1
    h = 0.5 * h * (1.0 + lax.erf(h * _INV_SQRT_2))
    return h @ w2 + b2


if __name__ == "__main__":
    # Small shapes consistent with the module: dim=32, n_expand=4 -> hidden=128.
    batch, seq, dim, n_expand = 2, 8, 32, 4
    hidden = n_expand * dim

    key = jax.random.PRNGKey(0)
    kx, k1, k2, k3, k4 = jax.random.split(key, 5)

    x = jax.random.normal(kx, (batch, seq, dim), dtype=jnp.float32)
    # Deterministic parameter init (PyTorch-Linear-like uniform bound).
    bound1 = 1.0 / (dim ** 0.5)
    bound2 = 1.0 / (hidden ** 0.5)
    w1 = jax.random.uniform(k1, (dim, hidden), jnp.float32, -bound1, bound1)
    b1 = jax.random.uniform(k2, (hidden,), jnp.float32, -bound1, bound1)
    w2 = jax.random.uniform(k3, (hidden, dim), jnp.float32, -bound2, bound2)
    b2 = jax.random.uniform(k4, (dim,), jnp.float32, -bound2, bound2)

    out = feed_forward(x, w1, b1, w2, b2)
    out = jax.block_until_ready(out)

    ref = _reference(x, w1, b1, w2, b2)
    assert out.shape == (batch, seq, dim)
    assert jnp.allclose(out, ref, atol=1e-5, rtol=1e-5), "mismatch vs reference"

    print("KERNEL_OK")
</pallas_src>

<mosaic_0001>
module attributes {stable_mosaic.version = 11 : i64} {
  func.func @_ffn_resident_kernel(%arg0: i32, %arg1: memref<16x128xf32, #tpu.memory_space<vmem>>, %arg2: memref<128x128xf32, #tpu.memory_space<vmem>>, %arg3: memref<1x128xf32, #tpu.memory_space<vmem>>, %arg4: memref<128x128xf32, #tpu.memory_space<vmem>>, %arg5: memref<1x128xf32, #tpu.memory_space<vmem>>, %arg6: memref<16x128xf32, #tpu.memory_space<vmem>>) attributes {dimension_semantics = [#tpu.dimension_semantics<parallel>], iteration_bounds = array<i64: 1>, scalar_prefetch = 0 : i64, scratch_operands = 0 : i64, tpu.core_type = #tpu.core_type<tc>, window_params = [{transform_indices = @transform_0, window_bounds = array<i64: 16, 128>}, {pipeline_mode = #tpu.pipeline_mode<synchronous>, transform_indices = @transform_1, window_bounds = array<i64: 128, 128>}, {pipeline_mode = #tpu.pipeline_mode<synchronous>, transform_indices = @transform_2, window_bounds = array<i64: 1, 128>}, {pipeline_mode = #tpu.pipeline_mode<synchronous>, transform_indices = @transform_3, window_bounds = array<i64: 128, 128>}, {pipeline_mode = #tpu.pipeline_mode<synchronous>, transform_indices = @transform_4, window_bounds = array<i64: 1, 128>}, {transform_indices = @transform_5, window_bounds = array<i64: 16, 128>}]} {
    %c0 = arith.constant 0 : index
    %c0_0 = arith.constant 0 : index
    %0 = vector.load %arg1[%c0, %c0_0] : memref<16x128xf32, #tpu.memory_space<vmem>>, vector<16x128xf32>
    %c0_1 = arith.constant 0 : index
    %c0_2 = arith.constant 0 : index
    %1 = vector.load %arg2[%c0_1, %c0_2] : memref<128x128xf32, #tpu.memory_space<vmem>>, vector<128x128xf32>
    %cst = arith.constant dense<0.000000e+00> : vector<16x128xf32>
    %2 = tpu.matmul %0, %1, %cst {dimension_numbers = #tpu.dot_dimension_numbers<[1], [0], [0], [1], [0, 0, 1, 1], [], []>} : vector<16x128xf32>, vector<128x128xf32>, vector<16x128xf32> -> vector<16x128xf32>
    %c0_3 = arith.constant 0 : index
    %c0_4 = arith.constant 0 : index
    %3 = vector.load %arg3[%c0_3, %c0_4] : memref<1x128xf32, #tpu.memory_space<vmem>>, vector<1x128xf32>
    %4 = vector.broadcast %3 : vector<1x128xf32> to vector<16x128xf32>
    %5 = arith.addf %2, %4 : vector<16x128xf32>
    %cst_5 = arith.constant 5.000000e-01 : f32
    %6 = vector.broadcast %cst_5 : f32 to vector<16x128xf32>
    %7 = arith.mulf %6, %5 : vector<16x128xf32>
    %cst_6 = arith.constant 0.707106769 : f32
    %8 = vector.broadcast %cst_6 : f32 to vector<16x128xf32>
    %9 = arith.mulf %5, %8 : vector<16x128xf32>
    %10 = math.erf %9 : vector<16x128xf32>
    %cst_7 = arith.constant 1.000000e+00 : f32
    %11 = vector.broadcast %cst_7 : f32 to vector<16x128xf32>
    %12 = arith.addf %11, %10 : vector<16x128xf32>
    %13 = arith.mulf %7, %12 : vector<16x128xf32>
    %c0_8 = arith.constant 0 : index
    %c0_9 = arith.constant 0 : index
    %14 = vector.load %arg4[%c0_8, %c0_9] : memref<128x128xf32, #tpu.memory_space<vmem>>, vector<128x128xf32>
    %cst_10 = arith.constant dense<0.000000e+00> : vector<16x128xf32>
    %15 = tpu.matmul %13, %14, %cst_10 {dimension_numbers = #tpu.dot_dimension_numbers<[1], [0], [0], [1], [0, 0, 1, 1], [], []>} : vector<16x128xf32>, vector<128x128xf32>, vector<16x128xf32> -> vector<16x128xf32>
    %c0_11 = arith.constant 0 : index
    %c0_12 = arith.constant 0 : index
    %16 = vector.load %arg5[%c0_11, %c0_12] : memref<1x128xf32, #tpu.memory_space<vmem>>, vector<1x128xf32>
    %17 = vector.broadcast %16 : vector<1x128xf32> to vector<16x128xf32>
    %18 = arith.addf %15, %17 : vector<16x128xf32>
    %c0_13 = arith.constant 0 : index
    %c0_14 = arith.constant 0 : index
    %19 = vector.load %arg6[%c0_13, %c0_14] : memref<16x128xf32, #tpu.memory_space<vmem>>, vector<16x128xf32>
    tpu.vector_store %arg6[%c0_13, %c0_14], %18 {strides = array<i32>} : memref<16x128xf32, #tpu.memory_space<vmem>>, vector<16x128xf32>,
    return
  }
  func.func @transform_0(%arg0: i32) -> (i32, i32) {
    %c0_i32 = arith.constant 0 : i32
    %c0_i32_0 = arith.constant 0 : i32
    return %arg0, %c0_i32 : i32, i32
  }
  func.func @transform_1(%arg0: i32) -> (i32, i32) {
    %c0_i32 = arith.constant 0 : i32
    %c0_i32_0 = arith.constant 0 : i32
    %c0_i32_1 = arith.constant 0 : i32
    return %c0_i32, %c0_i32_0 : i32, i32
  }
  func.func @transform_2(%arg0: i32) -> (i32, i32) {
    %c0_i32 = arith.constant 0 : i32
    %c0_i32_0 = arith.constant 0 : i32
    %c0_i32_1 = arith.constant 0 : i32
    return %c0_i32, %c0_i32_0 : i32, i32
  }
  func.func @transform_3(%arg0: i32) -> (i32, i32) {
    %c0_i32 = arith.constant 0 : i32
    %c0_i32_0 = arith.constant 0 : i32
    %c0_i32_1 = arith.constant 0 : i32
    return %c0_i32, %c0_i32_0 : i32, i32
  }
  func.func @transform_4(%arg0: i32) -> (i32, i32) {
    %c0_i32 = arith.constant 0 : i32
    %c0_i32_0 = arith.constant 0 : i32
    %c0_i32_1 = arith.constant 0 : i32
    return %c0_i32, %c0_i32_0 : i32, i32
  }
  func.func @transform_5(%arg0: i32) -> (i32, i32) {
    %c0_i32 = arith.constant 0 : i32
    %c0_i32_0 = arith.constant 0 : i32
    return %arg0, %c0_i32 : i32, i32
  }
}

</mosaic_0001>

<bundles_post_ra>
// kernel: feed_forward.1
= control target key start
LH: loop header
LB: loop body
LE: loop exit
PB: predicated region body
PF: predicated region fallthrough
CT: control target
= control target key end

     0   :  { %s490_s1 = inlined_call_operand.vmem [shape: f32[128,128], index: 1, kind: input, shape index: {}]   ;;  %s491_s0 = inlined_call_operand.vmem [shape: f32[16,128], index: 0, kind: input, shape index: {}]   ;;  %s492_s3 = inlined_call_operand.vmem [shape: f32[128,128], index: 3, kind: input, shape index: {}]   ;;  %s493_s2 = inlined_call_operand.vmem [shape: f32[1,128], index: 2, kind: input, shape index: {}]   ;;  %s494_s4 = inlined_call_operand.vmem [shape: f32[1,128], index: 4, kind: input, shape index: {}]   ;;  %s495_s5 = inlined_call_operand.vmem [shape: f32[16,128], index: 5, kind: output, shape index: {}]  }
   0x1   :  { %v37_v0 = vld [vmem:[%s490_s1 + $0x78] sm:$0xff]  ;;  %v36_v1 = vld [vmem:[%s490_s1 + $0x70] sm:$0xff]  ;;  %v35_v2 = vld [vmem:[%s490_s1 + $0x68] sm:$0xff] }
   0x2   :  { %272 = vmatprep.subr.mxu0 %v37_v0  ;;  %v34_v3 = vld [vmem:[%s490_s1 + $0x60] sm:$0xff]  ;;  %v33_v5 = vld [vmem:[%s490_s1 + $0x58] sm:$0xff]  ;;  %v144_v7 = vld [vmem:[%s492_s3 + $0x70] sm:$0xff] }
   0x3   :  { %273 = vmatpush3.msra.mxu0 %v37_v0  ;;  %v20_v4 = vld [vmem:[%s491_s0] sm:$0xff]  ;;  %v145_v6 = vld [vmem:[%s492_s3 + $0x78] sm:$0xff]  ;;  %v32_v8 = vld [vmem:[%s490_s1 + $0x50] sm:$0xff] }
   0x4   :  { %274 = vmatprep.subr.mxu0 %v36_v1  ;;  %304 = vmatprep.mubr.f32.mxu0 %v20_v4  ;;  %v143_v9 = vld [vmem:[%s492_s3 + $0x68] sm:$0xff]  ;;  %v30_v11 = vld [vmem:[%s490_s1 + $0x40] sm:$0xff]  ;;  %v29_v12 = vld [vmem:[%s490_s1 + $0x38] sm:$0xff] }
   0x5   :  { %275 = vmatpush3.msra.mxu0 %v36_v1  ;;  %307 = vmatprep.subr.mxu1 %v145_v6  ;;  %v31_v10 = vld [vmem:[%s490_s1 + $0x48] sm:$0xff]  ;;  %v28_v13 = vld [vmem:[%s490_s1 + $0x30] sm:$0xff]  ;;  %v26_v15 = vld [vmem:[%s490_s1 + $0x20] sm:$0xff] }
   0x6   :  { %276 = vmatprep.subr.mxu0 %v35_v2  ;;  %308 = vmatpush3.msra.mxu1 %v145_v6  ;;  %v27_v14 = vld [vmem:[%s490_s1 + $0x28] sm:$0xff]  ;;  %v25_v16 = vld [vmem:[%s490_s1 + $0x18] sm:$0xff]  ;;  %v24_v17 = vld [vmem:[%s490_s1 + $0x10] sm:$0xff] }
   0x7   :  { %277 = vmatpush3.msra.mxu0 %v35_v2  ;;  %309 = vmatprep.subr.mxu1 %v144_v7  ;;  %v23_v18 = vld [vmem:[%s490_s1 + $0x8] sm:$0xff]  ;;  %v22_v19 = vld [vmem:[%s490_s1] sm:$0xff]  ;;  %v141_v22 = vld [vmem:[%s492_s3 + $0x58] sm:$0xff] }
   0x8   :  { %278 = vmatprep.subr.mxu0 %v34_v3  ;;  %310 = vmatpush3.msra.mxu1 %v144_v7  ;;  %v21_v20 = vld [vmem:[%s491_s0 + $0x8] sm:$0xff]  ;;  %v142_v21 = vld [vmem:[%s492_s3 + $0x60] sm:$0xff]  ;;  %v140_v23 = vld [vmem:[%s492_s3 + $0x50] sm:$0xff] }
   0x9   :  { %279 = vmatpush3.msra.mxu0 %v34_v3  ;;  %311 = vmatprep.subr.mxu1 %v143_v9  ;;  %v139_v24 = vld [vmem:[%s492_s3 + $0x48] sm:$0xff]  ;;  %v138_v25 = vld [vmem:[%s492_s3 + $0x40] sm:$0xff]  ;;  %v137_v26 = vld [vmem:[%s492_s3 + $0x38] sm:$0xff] }
   0xa   :  { %280 = vmatprep.subr.mxu0 %v33_v5  ;;  %312 = vmatpush3.msra.mxu1 %v143_v9  ;;  %v136_v27 = vld [vmem:[%s492_s3 + $0x30] sm:$0xff]  ;;  %v135_v28 = vld [vmem:[%s492_s3 + $0x28] sm:$0xff]  ;;  %v134_v29 = vld [vmem:[%s492_s3 + $0x20] sm:$0xff] }
   0xb   :  { %281 = vmatpush3.msra.mxu0 %v33_v5  ;;  %313 = vmatprep.subr.mxu1 %v142_v21  ;;  %v133_v30 = vld [vmem:[%s492_s3 + $0x18] sm:$0xff]  ;;  %v132_v31 = vld [vmem:[%s492_s3 + $0x10] sm:$0xff]  ;;  %v131_v32 = vld [vmem:[%s492_s3 + $0x8] sm:$0xff] }
   0xc   :  { %282 = vmatprep.subr.mxu0 %v32_v8  ;;  %314 = vmatpush3.msra.mxu1 %v142_v21  ;;  %v130_v33 = vld [vmem:[%s492_s3] sm:$0xff] }
   0xd   :  { %283 = vmatpush3.msra.mxu0 %v32_v8  ;;  %315 = vmatprep.subr.mxu1 %v141_v22  ;;  %v234_v34 = vld [vmem:[%s493_s2] ss:$0 sm:$0xff] }
   0xe   :  { %284 = vmatprep.subr.mxu0 %v31_v10  ;;  %316 = vmatpush3.msra.mxu1 %v141_v22  ;;  %v235_v49 = vld [vmem:[%s494_s4] ss:$0 sm:$0xff] }
   0xf   :  { %285 = vmatpush3.msra.mxu0 %v31_v10  ;;  %317 = vmatprep.subr.mxu1 %v140_v23 }
  0x10   :  { %286 = vmatprep.subr.mxu0 %v30_v11  ;;  %318 = vmatpush3.msra.mxu1 %v140_v23 }
  0x11   :  { %287 = vmatpush3.msra.mxu0 %v30_v11  ;;  %319 = vmatprep.subr.mxu1 %v139_v24 }
  0x12   :  { %288 = vmatprep.subr.mxu0 %v29_v12  ;;  %320 = vmatpush3.msra.mxu1 %v139_v24 }
  0x13   :  { %289 = vmatpush3.msra.mxu0 %v29_v12  ;;  %321 = vmatprep.subr.mxu1 %v138_v25 }
  0x14   :  { %290 = vmatprep.subr.mxu0 %v28_v13  ;;  %322 = vmatpush3.msra.mxu1 %v138_v25 }
  0x15   :  { %291 = vmatpush3.msra.mxu0 %v28_v13  ;;  %323 = vmatprep.subr.mxu1 %v137_v26 }
  0x16   :  { %292 = vmatprep.subr.mxu0 %v27_v14  ;;  %324 = vmatpush3.msra.mxu1 %v137_v26 }
  0x17   :  { %293 = vmatpush3.msra.mxu0 %v27_v14  ;;  %325 = vmatprep.subr.mxu1 %v136_v27 }
  0x18   :  { %294 = vmatprep.subr.mxu0 %v26_v15  ;;  %326 = vmatpush3.msra.mxu1 %v136_v27 }
  0x19   :  { %295 = vmatpush3.msra.mxu0 %v26_v15  ;;  %327 = vmatprep.subr.mxu1 %v135_v28 }
  0x1a   :  { %296 = vmatprep.subr.mxu0 %v25_v16  ;;  %328 = vmatpush3.msra.mxu1 %v135_v28 }
  0x1b   :  { %297 = vmatpush3.msra.mxu0 %v25_v16  ;;  %329 = vmatprep.subr.mxu1 %v134_v29 }
  0x1c   :  { %298 = vmatprep.subr.mxu0 %v24_v17  ;;  %330 = vmatpush3.msra.mxu1 %v134_v29 }
  0x1d   :  { %299 = vmatpush3.msra.mxu0 %v24_v17  ;;  %331 = vmatprep.subr.mxu1 %v133_v30 }
  0x1e   :  { %300 = vmatprep.subr.mxu0 %v23_v18  ;;  %332 = vmatpush3.msra.mxu1 %v133_v30 }
  0x1f   :  { %301 = vmatpush3.msra.mxu0 %v23_v18  ;;  %333 = vmatprep.subr.mxu1 %v132_v31 }
  0x20   :  { %302 = vmatprep.subr.mxu0 %v22_v19  ;;  %334 = vmatpush3.msra.mxu1 %v132_v31 }
  0x21   :  { %303 = vmatpush3.msra.mxu0 %v22_v19  ;;  %335 = vmatprep.subr.mxu1 %v131_v32 }
  0x22   :  { %305 = vmatmul.mubr.f32.vlgmr.msra.gmra.mxu0 %v21_v20  ;;  %336 = vmatpush3.msra.mxu1 %v131_v32 }
  0x23   :  { %337 = vmatprep.subr.mxu1 %v130_v33 }
  0x24   :  { %338 = vmatpush3.msra.mxu1 %v130_v33 }
  0xe2   :  { %v306_v35 = vpop.f32.mrf.mxu0 }
  0xe3   :  { %v117_v36 = vadd.f32 %v306_v35, %v234_v34 }
  0xe4   :  { %v111_v37 = vpop.f32.mrf.mxu0 }
  0xe5   :  { %v123_v38 = vmul.f32 0.70710677, %v117_v36  ;;  %v112_v39 = vadd.f32 %v234_v34, %v111_v37  ;;  %v121_v46 = vmul.f32 0.5, %v117_v36 }
  0xe7   :  { %342 = verf.f32 %v123_v38  ;;  %v122_v40 = vmul.f32 0.70710677, %v112_v39  ;;  %v120_v44 = vmul.f32 0.5, %v112_v39 }
  0xe9   :  { %344 = verf.f32 %v122_v40 }
  0xf4   :  { %v343_v41 = vpop.eup %342 }
  0xf5   :  { %v127_v43 = vadd.f32 1.0, %v343_v41 }
  0xf6   :  { %v345_v42 = vpop.eup %344 }
  0xf7   :  { %v126_v45 = vadd.f32 1.0, %v345_v42  ;;  %v129_v48 = vmul.f32 %v127_v43, %v121_v46 }
  0xf9   :  { %v128_v47 = vmul.f32 %v126_v45, %v120_v44 }
  0xfb   :  { %339 = vmatprep.mubr.f32.mxu1 %v128_v47 }
  0xfc   :  { %340 = vmatmul.mubr.f32.vlgmr.msra.gmra.mxu1 %v129_v48 }
 0x1bc   :  { %v341_v50 = vpop.f32.mrf.mxu1 }
 0x1bd   :  { %v225_v51 = vadd.f32 %v341_v50, %v235_v49 }
 0x1be   :  { %v219_v52 = vpop.f32.mrf.mxu1 }
 0x1bf   :  { %229 = vst [vmem:[%s495_s5 + $0x8] sm:$0xff] %v225_v51  ;;  %v220_v53 = vadd.f32 %v235_v49, %v219_v52 }
 0x1c1   :  { %228 = vst [vmem:[%s495_s5] sm:$0xff] %v220_v53 }

</bundles_post_ra>
